<compile_context>
chip_gen: v6e
topology: v6e:2x2x1
jax: 0.10.0
libtpu: 0.0.40
codegen_flags: <defaults>
</compile_context>

<pallas_src>
import jax
import jax.numpy as jnp
from jax.experimental import pallas as pl
from jax.experimental.pallas import tpu as pltpu

LEAKY_SLOPE = 0.01  # torch.nn.LeakyReLU default
BN_EPS = 1e-5       # torch.nn.BatchNorm1d default

# Packed head-parameter layout (rows, cols of a single f32 [104, 32] array).
HEAD_PACK_ROWS, HEAD_PACK_COLS = 104, 32


def _lrelu(v):
    return jnp.where(v >= 0.0, v, LEAKY_SLOPE * v)


# --------------------------- GCN layer kernel ------------------------------ #
# One GCN layer on the block-diagonal (per-graph) adjacency:
#   Y[b] = LeakyReLU( Â[b] @ (X[b] @ W) + bias )
# grid = (B, Ng//tm, Ng//tk); f32 accumulator; bf16 streamed operands.
def gcn_layer_kernel(x_ref, a_ref, w_ref, b_ref, y_ref, acc_ref):
    @pl.when(pl.program_id(2) == 0)
    def _():
        acc_ref[...] = jnp.zeros_like(acc_ref)

    # (tk, Fin) @ (Fin, Fout) -> f32, recomputed per row tile (cost ~Fout/tm of A matmul)
    xw = jnp.dot(x_ref[0], w_ref[...], preferred_element_type=jnp.float32)
    # (tm, tk) @ (tk, Fout) -> f32 accumulate (bf16 MXU path)
    acc_ref[...] += jnp.dot(a_ref[0], xw.astype(jnp.bfloat16),
                            preferred_element_type=jnp.float32)

    @pl.when(pl.program_id(2) == pl.num_programs(2) - 1)
    def _():
        h = acc_ref[...] + b_ref[...]
        y_ref[0] = _lrelu(h).astype(y_ref.dtype)


def gcn_layer(x_bf, a_bf, w_bf, bias_f32, *, tm, tk):
    B, Ng, Fin = x_bf.shape
    Fout = w_bf.shape[1]
    n_row, n_k = Ng // tm, Ng // tk

    flops = 2 * B * Ng * Ng * Fout + 2 * B * n_row * Ng * Fin * Fout
    bytes_accessed = (B * Ng * Ng * 2            # Â tiles (bf16), read once each
                      + B * n_row * Ng * Fin * 2  # X tiles re-read per row tile
                      + B * Ng * Fout * 2         # Y output (bf16)
                      + Fin * Fout * 2 + Fout * 4)

    return pl.pallas_call(
        gcn_layer_kernel,
        out_shape=jax.ShapeDtypeStruct((B, Ng, Fout), jnp.bfloat16),
        grid_spec=pltpu.PrefetchScalarGridSpec(
            num_scalar_prefetch=0,
            grid=(B, n_row, n_k),
            in_specs=[
                pl.BlockSpec((1, tk, Fin), lambda b, i, k: (b, k, 0)),   # X k-slab
                pl.BlockSpec((1, tm, tk), lambda b, i, k: (b, i, k)),    # Â tile
                pl.BlockSpec((Fin, Fout), lambda b, i, k: (0, 0)),       # W (resident)
                pl.BlockSpec((1, Fout), lambda b, i, k: (0, 0)),         # bias (resident)
            ],
            out_specs=pl.BlockSpec((1, tm, Fout), lambda b, i, k: (b, i, 0)),
            scratch_shapes=[pltpu.VMEM((tm, Fout), jnp.float32)],
        ),
        compiler_params=pltpu.CompilerParams(
            dimension_semantics=("parallel", "parallel", "arbitrary"),
            vmem_limit_bytes=48 * 1024 * 1024,   # safe on v7x (64 MiB phys), > v5e default
        ),
        cost_estimate=pl.CostEstimate(flops=flops, transcendentals=0,
                                      bytes_accessed=bytes_accessed),
    )(x_bf, a_bf, w_bf, bias_f32)


# ------------------------ pool + OGT + FC head kernel ---------------------- #
# Everything after the conv stack is tiny; one small kernel with a single
# packed parameter array (avoids ~19 separate sub-(8,128) VMEM DMAs).
def head_kernel(h2_ref, ogt_ref, p_ref, out_ref):
    ng = h2_ref.shape[1]
    # global_mean_pool over the node axis (per graph), f32 accumulation
    g = jnp.sum(h2_ref[...].astype(jnp.float32), axis=1) * (1.0 / ng)     # (B, 32)

    p = p_ref[...]
    wf1g = p[0:32, 0:28]      # fc Linear(42,28) weight, graph-embedding half
    wf1o = p[32:42, 0:28]     # fc Linear(42,28) weight, ogt-embedding half
    wf2 = p[42:70, 0:14]      # fc Linear(28,14)
    wo2 = p[70:90, 0:10]      # ogt Linear(20,10)
    wo1 = p[90:91, 0:20]      # ogt Linear(1,20) as a row
    bo1 = p[91:92, 0:20]
    bo2 = p[92:93, 0:10]
    bf1 = p[93:94, 0:28]
    bn1s = p[94:95, 0:28]     # BatchNorm1d(28) folded scale
    bn1b = p[95:96, 0:28]     # BatchNorm1d(28) folded shift
    bf2 = p[96:97, 0:14]
    bn2s = p[97:98, 0:14]
    bn2b = p[98:99, 0:14]
    wf3 = p[99:100, 0:14]     # fc Linear(14,1) as a row
    bf3 = p[100:101, 0:1]

    # ogt_block (dropout = eval identity)
    o = _lrelu(ogt_ref[...] * wo1 + bo1)                                   # (B, 20)
    o = _lrelu(jnp.dot(o, wo2, preferred_element_type=jnp.float32) + bo2)  # (B, 10)

    # fc_block; torch.cat([g, o], dim=1) @ W1^T done with a split weight
    f = _lrelu(jnp.dot(g, wf1g, preferred_element_type=jnp.float32)
               + jnp.dot(o, wf1o, preferred_element_type=jnp.float32) + bf1)
    f = f * bn1s + bn1b
    f = _lrelu(jnp.dot(f, wf2, preferred_element_type=jnp.float32) + bf2)
    f = f * bn2s + bn2b
    out_ref[...] = jnp.sum(f * wf3, axis=-1, keepdims=True) + bf3


def head_call(h2_bf, ogt, packed):
    B = ogt.shape[0]
    vspec = pl.BlockSpec(memory_space=pltpu.MemorySpace.VMEM)
    return pl.pallas_call(
        head_kernel,
        out_shape=jax.ShapeDtypeStruct((B, 1), jnp.float32),
        in_specs=[vspec, vspec, vspec],
        out_specs=vspec,
    )(h2_bf, ogt, packed)


# ------------------------------ full forward ------------------------------- #
def multigcn_forward(params, node_feat, a_hat, ogt, *, tm=128, tk=128):
    """node_feat: [B, Ng, F] f32, a_hat: [B, Ng, Ng] f32 (per-graph Â), ogt: [B,1]."""
    B, Ng, _ = node_feat.shape
    tm, tk = min(tm, Ng), min(tk, Ng)
    assert Ng % tm == 0 and Ng % tk == 0, "node count must be a multiple of tile size"

    x_bf = node_feat.astype(jnp.bfloat16)
    a_bf = a_hat.astype(jnp.bfloat16)
    w1_bf = params["w1_t"].astype(jnp.bfloat16)
    w2_bf = params["w2_t"].astype(jnp.bfloat16)

    h1 = gcn_layer(x_bf, a_bf, w1_bf, params["b1"], tm=tm, tk=tk)
    h2 = gcn_layer(h1, a_bf, w2_bf, params["b2"], tm=tm, tk=tk)
    # TODO(synk): for very large graphs the head should stream H2 in node tiles
    # (or the pool should be fused into the second GCN layer); fine at these sizes.
    return head_call(h2, ogt, params["head_packed"])


# ------------------------------- glue (JAX) -------------------------------- #
def pack_head_params(p):
    P = jnp.zeros((HEAD_PACK_ROWS, HEAD_PACK_COLS), jnp.float32)
    P = P.at[0:32, 0:28].set(p["wf1g_t"])
    P = P.at[32:42, 0:28].set(p["wf1o_t"])
    P = P.at[42:70, 0:14].set(p["wf2_t"])
    P = P.at[70:90, 0:10].set(p["wo2_t"])
    P = P.at[90, 0:20].set(p["wo1_row"][0])
    P = P.at[91, 0:20].set(p["bo1"][0])
    P = P.at[92, 0:10].set(p["bo2"][0])
    P = P.at[93, 0:28].set(p["bf1"][0])
    P = P.at[94, 0:28].set(p["bn1_scale"][0])
    P = P.at[95, 0:28].set(p["bn1_shift"][0])
    P = P.at[96, 0:14].set(p["bf2"][0])
    P = P.at[97, 0:14].set(p["bn2_scale"][0])
    P = P.at[98, 0:14].set(p["bn2_shift"][0])
    P = P.at[99, 0:14].set(p["wf3_row"][0])
    P = P.at[100, 0:1].set(p["bf3"][0])
    return P


def init_params(key):
    """Deterministic synthetic parameters (torch nn.Linear shapes noted)."""
    ks = jax.random.split(key, 16)

    def lin_w(k, out_dim, in_dim):       # torch weight shape: (out, in)
        return 0.1 * jax.random.normal(k, (out_dim, in_dim), jnp.float32)

    def lin_b(k, dim):
        return 0.05 * jax.random.normal(k, (1, dim), jnp.float32)

    F, DH = 32, 32
    w1, b1 = lin_w(ks[0], DH, F), lin_b(ks[1], DH)     # GCNConv(32,32)
    w2, b2 = lin_w(ks[2], DH, DH), lin_b(ks[3], DH)    # GCNConv(32,32)
    wo1, bo1 = lin_w(ks[4], 20, 1), lin_b(ks[5], 20)   # ogt Linear(1,20)
    wo2, bo2 = lin_w(ks[6], 10, 20), lin_b(ks[7], 10)  # ogt Linear(20,10)
    wf1, bf1 = lin_w(ks[8], 28, 42), lin_b(ks[9], 28)  # fc Linear(42,28)
    wf2, bf2 = lin_w(ks[10], 14, 28), lin_b(ks[11], 14)  # fc Linear(28,14)
    wf3, bf3 = lin_w(ks[12], 1, 14), lin_b(ks[13], 1)    # fc Linear(14,1)

    def bn_fold(k, dim):   # eval-mode BatchNorm1d folded to per-channel scale/shift
        kg, kb, km, kv = jax.random.split(k, 4)
        gamma = 1.0 + 0.1 * jax.random.normal(kg, (1, dim), jnp.float32)
        beta = 0.05 * jax.random.normal(kb, (1, dim), jnp.float32)
        mean = 0.1 * jax.random.normal(km, (1, dim), jnp.float32)
        var = 1.0 + 0.1 * jax.random.uniform(kv, (1, dim), jnp.float32)
        scale = gamma * jax.lax.rsqrt(var + BN_EPS)
        return scale, beta - mean * scale

    bn1s, bn1b = bn_fold(ks[14], 28)
    bn2s, bn2b = bn_fold(ks[15], 14)

    params = dict(
        w1_t=w1.T, b1=b1, w2_t=w2.T, b2=b2,
        wo1_row=wo1.T, bo1=bo1, wo2_t=wo2.T, bo2=bo2,
        wf1g_t=wf1[:, :F].T, wf1o_t=wf1[:, F:].T, bf1=bf1,
        bn1_scale=bn1s, bn1_shift=bn1b,
        wf2_t=wf2.T, bf2=bf2,
        bn2_scale=bn2s, bn2_shift=bn2b,
        wf3_row=wf3, bf3=bf3,
    )
    params["head_packed"] = pack_head_params(params)
    return params


def build_gcn_adj(edge_index, num_nodes):
    """Dense Â = D^{-1/2}(A+I)D^{-1/2}, matching PyG gcn_norm with add_self_loops."""
    src, dst = edge_index
    A = jnp.zeros((num_nodes, num_nodes), jnp.float32).at[dst, src].add(1.0)
    A = jnp.minimum(A, 1.0) + jnp.eye(num_nodes, dtype=jnp.float32)
    deg = A.sum(axis=1)
    dinv = jax.lax.rsqrt(deg)
    return A * dinv[:, None] * dinv[None, :]


def reference_forward(params, node_feat, a_hat, ogt):
    """Pure-JAX reference mirroring the eval-mode PyTorch forward with the same
    bf16-in / f32-accumulate numerics the kernel uses on the conv stack."""
    f32 = jnp.float32
    rb = lambda t: t.astype(jnp.bfloat16).astype(f32)   # round-through-bf16
    a = rb(a_hat)

    def layer(x, w_t, b):
        xw = jnp.einsum("bnf,fo->bno", rb(x), rb(w_t))
        h = jnp.einsum("bmn,bno->bmo", a, rb(xw)) + b
        return _lrelu(h).astype(jnp.bfloat16)

    h1 = layer(node_feat, params["w1_t"], params["b1"])
    h2 = layer(h1, params["w2_t"], params["b2"])
    g = jnp.mean(h2.astype(f32), axis=1)
    o = _lrelu(ogt * params["wo1_row"] + params["bo1"])
    o = _lrelu(o @ params["wo2_t"] + params["bo2"])
    f = _lrelu(g @ params["wf1g_t"] + o @ params["wf1o_t"] + params["bf1"])
    f = f * params["bn1_scale"] + params["bn1_shift"]
    f = _lrelu(f @ params["wf2_t"] + params["bf2"])
    f = f * params["bn2_scale"] + params["bn2_shift"]
    return f @ params["wf3_row"].T + params["bf3"]


if __name__ == "__main__":
    B, N_PER_GRAPH, F = 2, 256, 32   # 2 proteins x 256 residues; tiles 128x128 -> grid (2,2,2)

    key = jax.random.PRNGKey(0)
    kx, ko, kp = jax.random.split(key, 3)

    node_feat = jax.random.normal(kx, (B, N_PER_GRAPH, F), jnp.float32)
    ogt = 50.0 + 10.0 * jax.random.normal(ko, (B, 1), jnp.float32)

    # synthetic undirected chain 'contact' graph within each protein
    idx = jnp.arange(N_PER_GRAPH - 1, dtype=jnp.int32)
    edge_index = jnp.stack([jnp.concatenate([idx, idx + 1]),
                            jnp.concatenate([idx + 1, idx])])
    a_single = build_gcn_adj(edge_index, N_PER_GRAPH)
    a_hat = jnp.tile(a_single[None, :, :], (B, 1, 1))   # per-graph block of block-diag Â

    params = init_params(kp)

    out = multigcn_forward(params, node_feat, a_hat, ogt)
    out = jax.block_until_ready(out)

    ref = reference_forward(params, node_feat, a_hat, ogt)
    assert out.shape == (B, 1)
    assert jnp.allclose(out, ref, atol=1e-2, rtol=1e-2), (out, ref)

    # TODO(synk): training-mode stochastic regularizers (dropout / dropedge / dropnode)
    # and the disabled pLDDT / bfactor / feat2ffc branches are not exercised here.
    print("KERNEL_OK")
</pallas_src>

<mosaic_0001>
module attributes {stable_mosaic.version = 11 : i64} {
  func.func @gcn_layer_kernel(%arg0: i32, %arg1: i32, %arg2: i32, %arg3: memref<1x128x32xbf16, #tpu.memory_space<vmem>>, %arg4: memref<1x128x128xbf16, #tpu.memory_space<vmem>>, %arg5: memref<32x32xbf16, #tpu.memory_space<vmem>>, %arg6: memref<1x32xf32, #tpu.memory_space<vmem>>, %arg7: memref<1x128x32xbf16, #tpu.memory_space<vmem>>, %arg8: memref<128x32xf32, #tpu.memory_space<vmem>>) attributes {dimension_semantics = [#tpu.dimension_semantics<parallel>, #tpu.dimension_semantics<parallel>, #tpu.dimension_semantics<arbitrary>], iteration_bounds = array<i64: 2, 2, 2>, scalar_prefetch = 0 : i64, scratch_operands = 1 : i64, tpu.core_type = #tpu.core_type<tc>, window_params = [{transform_indices = @transform_0, window_bounds = array<i64: 1, 128, 32>}, {transform_indices = @transform_1, window_bounds = array<i64: 1, 128, 128>}, {pipeline_mode = #tpu.pipeline_mode<synchronous>, transform_indices = @transform_2, window_bounds = array<i64: 32, 32>}, {pipeline_mode = #tpu.pipeline_mode<synchronous>, transform_indices = @transform_3, window_bounds = array<i64: 1, 32>}, {transform_indices = @transform_4, window_bounds = array<i64: 1, 128, 32>}]} {
    %c0_i32 = arith.constant 0 : i32
    %0 = arith.cmpi eq, %arg2, %c0_i32 : i32
    %1 = arith.extui %0 : i1 to i32
    %c0_i32_0 = arith.constant 0 : i32
    %2 = arith.cmpi ne, %1, %c0_i32_0 : i32
    scf.if %2 {
      %cst_14 = arith.constant 0.000000e+00 : f32
      %17 = vector.broadcast %cst_14 : f32 to vector<128x32xf32>
      %c0_15 = arith.constant 0 : index
      %c0_16 = arith.constant 0 : index
      %18 = vector.load %arg8[%c0_15, %c0_16] : memref<128x32xf32, #tpu.memory_space<vmem>>, vector<128x32xf32>
      tpu.vector_store %arg8[%c0_15, %c0_16], %17 {strides = array<i32>} : memref<128x32xf32, #tpu.memory_space<vmem>>, vector<128x32xf32>,
    } else {
    }
    %c0 = arith.constant 0 : index
    %c0_1 = arith.constant 0 : index
    %c0_2 = arith.constant 0 : index
    %3 = vector.load %arg3[%c0, %c0_1, %c0_2] : memref<1x128x32xbf16, #tpu.memory_space<vmem>>, vector<1x128x32xbf16>
    %4 = vector.shape_cast %3 : vector<1x128x32xbf16> to vector<128x32xbf16>
    %c0_3 = arith.constant 0 : index
    %c0_4 = arith.constant 0 : index
    %5 = vector.load %arg5[%c0_3, %c0_4] : memref<32x32xbf16, #tpu.memory_space<vmem>>, vector<32x32xbf16>
    %cst = arith.constant dense<0.000000e+00> : vector<128x32xf32>
    %6 = tpu.matmul %4, %5, %cst {dimension_numbers = #tpu.dot_dimension_numbers<[1], [0], [0], [1], [0, 0, 1, 1], [], []>} : vector<128x32xbf16>, vector<32x32xbf16>, vector<128x32xf32> -> vector<128x32xf32>
    %c0_5 = arith.constant 0 : index
    %c0_6 = arith.constant 0 : index
    %7 = vector.load %arg8[%c0_5, %c0_6] : memref<128x32xf32, #tpu.memory_space<vmem>>, vector<128x32xf32>
    %c0_7 = arith.constant 0 : index
    %c0_8 = arith.constant 0 : index
    %c0_9 = arith.constant 0 : index
    %8 = vector.load %arg4[%c0_7, %c0_8, %c0_9] : memref<1x128x128xbf16, #tpu.memory_space<vmem>>, vector<1x128x128xbf16>
    %9 = vector.shape_cast %8 : vector<1x128x128xbf16> to vector<128x128xbf16>
    %10 = arith.truncf %6 : vector<128x32xf32> to vector<128x32xbf16>
    %cst_10 = arith.constant dense<0.000000e+00> : vector<128x32xf32>
    %11 = tpu.matmul %9, %10, %cst_10 {dimension_numbers = #tpu.dot_dimension_numbers<[1], [0], [0], [1], [0, 0, 1, 1], [], []>} : vector<128x128xbf16>, vector<128x32xbf16>, vector<128x32xf32> -> vector<128x32xf32>
    %12 = arith.addf %7, %11 : vector<128x32xf32>
    %c0_11 = arith.constant 0 : index
    %c0_12 = arith.constant 0 : index
    %13 = vector.load %arg8[%c0_11, %c0_12] : memref<128x32xf32, #tpu.memory_space<vmem>>, vector<128x32xf32>
    tpu.vector_store %arg8[%c0_11, %c0_12], %12 {strides = array<i32>} : memref<128x32xf32, #tpu.memory_space<vmem>>, vector<128x32xf32>,
    %c1_i32 = arith.constant 1 : i32
    %14 = arith.cmpi eq, %arg2, %c1_i32 : i32
    %15 = arith.extui %14 : i1 to i32
    %c0_i32_13 = arith.constant 0 : i32
    %16 = arith.cmpi ne, %15, %c0_i32_13 : i32
    scf.if %16 {
      %c0_14 = arith.constant 0 : index
      %c0_15 = arith.constant 0 : index
      %17 = vector.load %arg8[%c0_14, %c0_15] : memref<128x32xf32, #tpu.memory_space<vmem>>, vector<128x32xf32>
      %c0_16 = arith.constant 0 : index
      %c0_17 = arith.constant 0 : index
      %18 = vector.load %arg6[%c0_16, %c0_17] : memref<1x32xf32, #tpu.memory_space<vmem>>, vector<1x32xf32>
      %19 = vector.broadcast %18 : vector<1x32xf32> to vector<128x32xf32>
      %20 = arith.addf %17, %19 : vector<128x32xf32>
      %cst_18 = arith.constant 0.000000e+00 : f32
      %21 = vector.broadcast %cst_18 : f32 to vector<128x32xf32>
      %22 = arith.cmpf oge, %20, %21 : vector<128x32xf32>
      %cst_19 = arith.constant 0.00999999977 : f32
      %23 = vector.broadcast %cst_19 : f32 to vector<128x32xf32>
      %24 = arith.mulf %23, %20 : vector<128x32xf32>
      %25 = arith.select %22, %20, %24 : vector<128x32xi1>, vector<128x32xf32>
      %26 = arith.truncf %25 : vector<128x32xf32> to vector<128x32xbf16>
      %c0_20 = arith.constant 0 : index
      %c0_21 = arith.constant 0 : index
      %c0_22 = arith.constant 0 : index
      %27 = vector.load %arg7[%c0_20, %c0_21, %c0_22] : memref<1x128x32xbf16, #tpu.memory_space<vmem>>, vector<1x128x32xbf16>
      %28 = vector.shape_cast %27 : vector<1x128x32xbf16> to vector<128x32xbf16>
      %29 = vector.shape_cast %26 : vector<128x32xbf16> to vector<1x128x32xbf16>
      tpu.vector_store %arg7[%c0_20, %c0_21, %c0_22], %29 {strides = array<i32>} : memref<1x128x32xbf16, #tpu.memory_space<vmem>>, vector<1x128x32xbf16>,
    } else {
    }
    return
  }
  func.func @transform_0(%arg0: i32, %arg1: i32, %arg2: i32) -> (i32, i32, i32) {
    %c0_i32 = arith.constant 0 : i32
    %c0_i32_0 = arith.constant 0 : i32
    return %arg0, %arg2, %c0_i32 : i32, i32, i32
  }
  func.func @transform_1(%arg0: i32, %arg1: i32, %arg2: i32) -> (i32, i32, i32) {
    %c0_i32 = arith.constant 0 : i32
    return %arg0, %arg1, %arg2 : i32, i32, i32
  }
  func.func @transform_2(%arg0: i32, %arg1: i32, %arg2: i32) -> (i32, i32) {
    %c0_i32 = arith.constant 0 : i32
    %c0_i32_0 = arith.constant 0 : i32
    %c0_i32_1 = arith.constant 0 : i32
    return %c0_i32, %c0_i32_0 : i32, i32
  }
  func.func @transform_3(%arg0: i32, %arg1: i32, %arg2: i32) -> (i32, i32) {
    %c0_i32 = arith.constant 0 : i32
    %c0_i32_0 = arith.constant 0 : i32
    %c0_i32_1 = arith.constant 0 : i32
    return %c0_i32, %c0_i32_0 : i32, i32
  }
  func.func @transform_4(%arg0: i32, %arg1: i32, %arg2: i32) -> (i32, i32, i32) {
    %c0_i32 = arith.constant 0 : i32
    %c0_i32_0 = arith.constant 0 : i32
    return %arg0, %arg1, %c0_i32 : i32, i32, i32
  }
}

</mosaic_0001>

<bundles_post_ra>
// kernel: tpu_custom_call.1
= control target key start
LH: loop header
LB: loop body
LE: loop exit
PB: predicated region body
PF: predicated region fallthrough
CT: control target
= control target key end

     0   :  { %s1722_s0 = inlined_call_operand.vmem [shape: bf16[2,256,32], index: 0, kind: input, shape index: {}]   ;;  %s1723_s1 = inlined_call_operand.hbm [shape: bf16[2,256,256], index: 1, kind: input, shape index: {}]   ;;  %s1724_s2 = inlined_call_operand.vmem [shape: bf16[32,32], index: 2, kind: input, shape index: {}]   ;;  %s1725_s3 = inlined_call_operand.vmem [shape: f32[1,32], index: 3, kind: input, shape index: {}]   ;;  %s1726_s4 = inlined_call_operand.vmem [shape: bf16[2,256,32], index: 4, kind: output, shape index: {}]  }
   0x1   :  { %1731 = sst [smem:[#allocation9_spill]] %s1724_s2 }
   0x2   :  { %1732 = sst [smem:[#allocation10_spill]] %s1725_s3 }
   0x3   :  { %1733 = sst [smem:[#allocation11_spill]] %s1726_s4 }
   0x4   :  { %9 = vsyncpa [#allocation4], 0 }
   0x5   :  { %11 = vsyncpa [#allocation4 + $0x1], 0  ;;  %s1447_s15 = smov 0   ;;  %s1449_s16 = smov 0  }
   0x6   :  { %s1451_s17 = smov 0   ;;  %s1453_s18 = smov 0  }
   0x7   :  { %s1455_s19 = smov 0   ;;  %s1457_s20 = smov 0  }
   0x8   :  { %s1459_s21 = smov 0   ;;  %s1461_s22 = smov 0  }
   0x9   :  { %s1463_s23 = smov 0   ;;  %s1465_s24 = smov 0  }
   0xa LB: > { %s1021_s25 = sadd.s32 4294967295, %s1415_s24   ;;  %s29_s26 = sadd.s32 1, %s1403_s21  ;;  %s1415_s24 = sphi %s1465_s24, %s17_s24   ;;  %s1411_s23 = sphi %s1463_s23, %s1754_s23   ;;  %s1407_s22 = sphi %s1461_s22, %s1753_s22   ;;  %s1403_s21 = sphi %s1459_s21, %s1752_s21   ;;  %s1399_s20 = sphi %s1457_s20, %s1751_s20   ;;  %s1395_s19 = sphi %s1455_s19, %s1750_s19   ;;  %s1391_s18 = sphi %s1453_s18, %s1749_s18   ;;  %s1387_s17 = sphi %s1451_s17, %s1748_s17   ;;  %s1383_s16 = sphi %s1449_s16, %s1747_s16   ;;  %s1379_s15 = sphi %s1447_s15, %s1746_s15  }
   0xb   : > { %p30_p0 = scmp.ge.s32.totalorder %s29_s26, 2  ;;  %s32_s27 = sadd.s32 1, %s1407_s22 }
   0xc   : > { %s36_s28 = sadd.s32 1, %s1411_s23  ;;  %s75_s29 = sadd.s32 1, %s1387_s17 }
   0xd   : > { %s1756_s26 = smov (%p30_p0, %s29_s26), 0  ;;  %s1758_s27 = smov (!%p30_p0, %s32_s27), %s1407_s22 }
   0xe   : > { %1734 = sst [smem:[#allocation6_spill]] %s1756_s26  ;;  %s71_s30 = ssub.s32 %s1403_s21, %s1756_s26 }
   0xf   : > { %p82_p1 = scmp.ne.s32.totalorder %s1387_s17, %s1383_s16  ;;  %p34_p2 = scmp.ge.s32.totalorder %s1758_s27, 2 }
  0x10   : > { %p83_p3 = scmp.eq.s32.totalorder %s1415_s24, 0  ;;  %p88_p4 = scmp.ne.s32.totalorder %s1383_s16, %s1379_s15 }
  0x11   : > { %p89_p5 = scmp.eq.s32.totalorder %s1021_s25, 0  ;;  %s1760_s27 = smov (%p34_p2, %s1758_s27), 0 }
  0x12   : > { %1735 = sst [smem:[#allocation7_spill]] %s1760_s27  ;;  %s1762_s28 = smov (!%p34_p2, %s36_s28), %s1411_s23 }
  0x13   : > { %s69_s5 = ssub.s32 %s1407_s22, %s1760_s27  ;;  %p1514_p6 = por %p83_p3, %p82_p1 }
  0x14   : > { %p38_p7 = scmp.ge.s32.totalorder %s1762_s28, 2  ;;  %p1518_p8 = por %p89_p5, %p88_p4 }
  0x15   : > { %p1202_p9 = scmp.lt.s32.totalorder %s1415_s24, 8  ;;  %s201_s8 = sand.u32 1, %s1387_s17  }
  0x16   : > { %s1764_s28 = smov (%p38_p7, %s1762_s28), 0  ;;  %s1085_s9 = sshll.u32 %s1407_s22, 5 }
  0x17   : > { %1738 = sst [smem:[#allocation8_spill]] %s1764_s28  ;;  %s68_s10 = ssub.s32 %s1411_s23, %s1764_s28 }
  0x18   : > { %s70_s11 = sor.u32 %s69_s5, %s68_s10  ;;  %s1025_s12 = sshll.u32 %s201_s8, 6 }
  0x19   : > { %s72_s13 = sor.u32 %s71_s30, %s70_s11  ;;  %s211_s14 = sadd.s32 %s1403_s21, %s1085_s9 }
  0x1a   : > { %p73_p10 = scmp.eq.s32.totalorder %s72_s13, 0  ;;  %s1028_s15 = sshll.u32 %s1411_s23, 6 }
  0x1b   : > { %s205_s25 = scalar_lea.vmem [#allocation3], %s1025_s12  ;;  %s213_s3 = sadd.s32 %s1028_s15, %s211_s14 }
  0x1c   : > { %s216_s27 = sshll.u32 %s205_s25, 4  ;;  %s1029_s2 = sshll.u32 %s213_s3, 6  ;;  %s217_s27 = int_to_ptr.vmem [resolvable:$true] %s216_s27 }
  0x1d   : > { %s1532_s26 = scalar_select %p73_p10, %s1387_s17, %s75_s29  }
  0x1e   : > { %p1538_p11 = pnand %p1202_p9, %p1514_p6  ;;  %s215_s30 = scalar_lea.hbm %s1723_s1, %s1029_s2 }
  0x1f   : > { %p1030_p12 = scmp.ge.s32.totalorder %s1415_s24, 1  ;;  %s202_s9 = scalar_lea.sflag [#allocation4], %s201_s8 }
  0x20   : > { %p1307_p13 = pneg %p1538_p11  ;;  %s1318_s29 = scalar_lea.vmem %s217_s27, 1024 }
  0x21   : > { %p1319_p0 = scmp.ne.s32.totalorder %s217_s27, %s1318_s29  ;;  %s1417_s3 = smov [#allocation3]  }
  0x22   : > { %s1323_s6 = sshll.u32 %s1417_s3, 4  ;;  %s1324_s6 = int_to_ptr.vmem [resolvable:$false] %s1323_s6 }
  0x23   : > { %p1321_p1 = pnand %p1319_p0, %p1307_p13  ;;  %s1325_s10 = scalar_lea.vmem %s1324_s6, 2048 }
  0x24   : > { %p1326_p3 = scmp.lt.s32.totalorder %s217_s27, %s1324_s6  ;;  %p1327_p4 = scmp.lt.s32.totalorder %s1325_s10, %s1318_s29 }
  0x25   : > { %p1322_p2 = pneg %p1321_p1 }
  0x26   : > { %p1328_p5 = por %p1327_p4, %p1326_p3 }
  0x28   : > { %p1329_p6 = pnand %p1328_p5, %p1322_p2 }
  0x2a   : > { %1332 = shalt.err (!%p1329_p6)
}
  0x2b   : > { %s1418_s28 = smov 128   ;;  %s1419_s2 = smov 64  }
  0x2c   : > { %s1420_s8 = smov 4   ;;  %p224_p7 = scmp.lt.s32.totalorder %s1415_s24, 9 }
  0x2d   : > { %1201 = dma.hbm_to_vmem [thread:$0]  (!%p1538_p11), %s215_s30, 1024, %s217_s27, %s202_s9, %s1418_s28, %s1419_s2, %s1420_s8  }
  0x2e   : > { %p225_p9 = pnand %p1030_p12, %p224_p7 }
  0x2f   : > { %s230_s11 = sand.u32 (!%p225_p9), 1, %s1383_s16  }
  0x30   : > { %228 = sbr.rel (%p225_p9) target bundleno = 591 (0x24f), region = 36  ;;  %s1031_s12 = sshll.u32 (!%p225_p9), %s230_s11, 6 }
  0x31   : > { %s231_s13 = scalar_lea.sflag (!%p225_p9), [#allocation4], %s230_s11  ;;  %s1554_s14 = scalar_lea.vmem (!%p225_p9), [#allocation3], %s1031_s12 }
  0x35   : > { %1374 = dma.done.wait (%p1518_p8), %s231_s13, 1024  }
  0x36   : > { %1376 = vsyncadd (%p1518_p8), %s231_s13, 4294966272  ;;  %s1032_s4 = sshll.u32 %s1391_s18, 4  ;;  %p273_p10 = scmp.lt.s32.totalorder %s1399_s20, 1 }
  0x37   : > { %p275_p11 = scmp.lt.s32.totalorder %s1032_s4, 31  ;;  %s1035_s27 = sshll.u32 %s1395_s19, 4 }
  0x38   : > { %s1766_s20 = smov (!%p273_p10, %s1399_s20), 1  ;;  %p286_p12 = scmp.lt.s32.totalorder %s1035_s27, 31 }
  0x39   : > { %s1768_s4 = smov (!%p275_p11, %s1032_s4), 31  ;;  %s1033_s15 = sshll.u32 %s1766_s20, 5 }
  0x3a   : > { %s278_s25 = sadd.s32 %s1033_s15, %s1768_s4  ;;  %s1770_s27 = smov (!%p286_p12, %s1035_s27), 31 }
  0x3b   : > { %s1034_s5 = sshll.u32 %s278_s25, 2  ;;  %s289_s7 = sadd.s32 %s1033_s15, %s1770_s27 }
  0x3c   : > { %s1567_s29 = scalar_lea.vmem %s1722_s0, %s1034_s5  ;;  %s1037_s3 = sshll.u32 %s289_s7, 2 }
  0x3d   : > { %s1740_s28 = sld [smem:[#allocation11_spill]]  ;;  %p1038_p8 = scmp.ne.s32.totalorder %s1391_s18, 0 }
  0x3f   : > { %297 = sbr.rel (%p1038_p8) target bundleno = 77 (0x4d), region = 44 }
  0x43   : > { %s1572_s2 = scalar_lea.vmem %s1740_s28, %s1037_s3 }
  0x44   : > { %vm298_vm0 = vcmask 261120   ;;  %v1421_v0 = vmov 0.0  }
  0x45   : > { %299 = vst.msk [vmem:[#allocation2] sm:$0xff] %vm298_vm0, %v1421_v0  ;;  %300 = vst.msk [vmem:[#allocation2 + $0x8] sm:$0xff] %vm298_vm0, %v1421_v0 }
  0x46   : > { %301 = vst.msk [vmem:[#allocation2 + $0x10] sm:$0xff] %vm298_vm0, %v1421_v0  ;;  %302 = vst.msk [vmem:[#allocation2 + $0x18] sm:$0xff] %vm298_vm0, %v1421_v0 }
  0x47   : > { %303 = vst.msk [vmem:[#allocation2 + $0x20] sm:$0xff] %vm298_vm0, %v1421_v0  ;;  %304 = vst.msk [vmem:[#allocation2 + $0x28] sm:$0xff] %vm298_vm0, %v1421_v0 }
  0x48   : > { %305 = vst.msk [vmem:[#allocation2 + $0x30] sm:$0xff] %vm298_vm0, %v1421_v0  ;;  %306 = vst.msk [vmem:[#allocation2 + $0x38] sm:$0xff] %vm298_vm0, %v1421_v0 }
  0x49   : > { %307 = vst.msk [vmem:[#allocation2 + $0x40] sm:$0xff] %vm298_vm0, %v1421_v0  ;;  %308 = vst.msk [vmem:[#allocation2 + $0x48] sm:$0xff] %vm298_vm0, %v1421_v0 }
  0x4a   : > { %309 = vst.msk [vmem:[#allocation2 + $0x50] sm:$0xff] %vm298_vm0, %v1421_v0  ;;  %310 = vst.msk [vmem:[#allocation2 + $0x58] sm:$0xff] %vm298_vm0, %v1421_v0 }
  0x4b   : > { %311 = vst.msk [vmem:[#allocation2 + $0x60] sm:$0xff] %vm298_vm0, %v1421_v0  ;;  %312 = vst.msk [vmem:[#allocation2 + $0x68] sm:$0xff] %vm298_vm0, %v1421_v0 }
  0x4c   : > { %313 = vst.msk [vmem:[#allocation2 + $0x70] sm:$0xff] %vm298_vm0, %v1421_v0  ;;  %314 = vst.msk [vmem:[#allocation2 + $0x78] sm:$0xff] %vm298_vm0, %v1421_v0 }
  0x4d PF: > { %s1741_s8 = sld [smem:[#allocation9_spill]]  ;;  %vm387_vm1 = vcmask 261120   ;;  %v1289_v3 = vld [vmem:[%s1567_s29] sm:$0xff]   ;;  %v1290_v4 = vld [vmem:[%s1567_s29 + $0x8] sm:$0xff]   ;;  %v1291_v5 = vld [vmem:[%s1567_s29 + $0x10] sm:$0xff]   ;;  %p1065_p13 = scmp.ne.s32.totalorder %s1391_s18, 1 }
  0x4e   : > { %1132 = vmatprep.mubr.msk.bf16.mxu0 %vm387_vm1, %v1289_v3  ;;  %v1292_v6 = vld [vmem:[%s1567_s29 + $0x18] sm:$0xff]   ;;  %v1293_v7 = vld [vmem:[%s1567_s29 + $0x20] sm:$0xff]   ;;  %v1294_v8 = vld [vmem:[%s1567_s29 + $0x28] sm:$0xff]   ;;  %s1742_s4 = sld [smem:[#allocation10_spill]] (!%p1065_p13) }
  0x4f   : > { %v1295_v9 = vld [vmem:[%s1567_s29 + $0x30] sm:$0xff]   ;;  %v1296_v10 = vld [vmem:[%s1567_s29 + $0x38] sm:$0xff]   ;;  %v1301_v12 = vld [vmem:[%s1554_s14] sm:$0xff]  }
  0x50   : > { %v1297_v11 = vld [vmem:[%s1554_s14 + $0x10] sm:$0xff]   ;;  %v1298_v37 = vld [vmem:[%s1554_s14 + $0x18] sm:$0xff]   ;;  %v1302_v38 = vld [vmem:[%s1554_s14 + $0x8] sm:$0xff]  }
  0x51   : > { %1168 = vmatprep.mubr.bf16.mxu1 %v1297_v11  ;;  %v1299_v39 = vld [vmem:[%s1554_s14 + $0x20] sm:$0xff]   ;;  %v1300_v40 = vld [vmem:[%s1554_s14 + $0x28] sm:$0xff]   ;;  %v1303_v41 = vld [vmem:[%s1554_s14 + $0x30] sm:$0xff]  }
  0x52   : > { %v1304_v42 = vld [vmem:[%s1554_s14 + $0x38] sm:$0xff]   ;;  %v515_v43 = vld [vmem:[#allocation2 + $0x30] sm:$0xff]  ;;  %v513_v46 = vld [vmem:[#allocation2 + $0x20] sm:$0xff] }
  0x53   : > { %v1287_v1 = vld [vmem:[%s1741_s8 + $0x8] sm:$0xff]   ;;  %v1288_v2 = vld [vmem:[%s1741_s8] sm:$0xff]   ;;  %v511_v44 = vld [vmem:[#allocation2 + $0x10] sm:$0xff] }
  0x54   : > { %1128 = vmatprep.subr.bf16.mxu0 %v1287_v1  ;;  %v509_v48 = vld [vmem:[#allocation2] sm:$0xff]  ;;  %v516_v52 = vld [vmem:[#allocation2 + $0x38] sm:$0xff]  ;;  %v514_v58 = vld [vmem:[#allocation2 + $0x28] sm:$0xff] }
  0x55   : > { %1129 = vmatpush3.bf16.msra.mxu0 %v1287_v1  ;;  %v512_v54 = vld [vmem:[#allocation2 + $0x18] sm:$0xff]  ;;  %v510_v60 = vld [vmem:[#allocation2 + $0x8] sm:$0xff]  ;;  %v519_v0 = vld [vmem:[#allocation2 + $0x50] sm:$0xff] }
  0x56   : > { %1130 = vmatprep.subr.bf16.mxu0 %v1288_v2  ;;  %v518_v11 = vld [vmem:[#allocation2 + $0x48] sm:$0xff] }
  0x59   : > { %1131 = vmatpush3.bf16.msra.mxu0 %v1288_v2 }
  0x5c   : > { %1133 = vmatmul.mubr.msk.bf16.vlgmr.msra.gmra.mxu0 %vm387_vm1, %v1290_v4 }
  0x5d   : > { %1136 = vmatprep.mubr.msk.bf16.mxu0 %vm387_vm1, %v1291_v5  ;;  %v517_v5 = vld [vmem:[#allocation2 + $0x40] sm:$0xff] }
  0x64   : > { %1137 = vmatmul.mubr.msk.bf16.gmra.mxu0 %vm387_vm1, %v1292_v6 }
  0x65   : > { %1140 = vmatprep.mubr.msk.bf16.mxu0 %vm387_vm1, %v1293_v7 }
  0x6c   : > { %1141 = vmatmul.mubr.msk.bf16.gmra.mxu0 %vm387_vm1, %v1294_v8  ;;  %v520_v8 = vld [vmem:[#allocation2 + $0x58] sm:$0xff] }
  0x6d   : > { %1144 = vmatprep.mubr.msk.bf16.mxu0 %vm387_vm1, %v1295_v9 }
  0x74   : > { %1145 = vmatmul.mubr.msk.bf16.gmra.mxu0 %vm387_vm1, %v1296_v10 }
  0x75   : > { %1164 = vmatprep.mubr.bf16.mxu0 %v1301_v12 }
 0x11c   : > { %v1134_v13 = vpop.f32.mrf.mxu0 }
 0x11e   : > { %v446_v14 = vpop.f32.mrf.mxu0 }
 0x120   : > { %v1135_v15 = vpop.f32.mrf.mxu0 }
 0x121   : > { %v542_v35 = vpack.c.bf16 %v1135_v15, %v1134_v13 }
 0x122   : > { %v449_v16 = vpop.f32.mrf.mxu0 }
 0x123   : > { %v541_v36 = vpack.c.bf16 %v449_v16, %v446_v14  ;;  %v523_v14 = vld [vmem:[#allocation2 + $0x70] sm:$0xff] }
 0x124   : > { %v1138_v17 = vpop.f32.mrf.mxu0 }
 0x126   : > { %v462_v18 = vpop.f32.mrf.mxu0 }
 0x128   : > { %v1139_v19 = vpop.f32.mrf.mxu0 }
 0x129   : > { %v544_v33 = vpack.c.bf16 %v1139_v19, %v1138_v17  ;;  %v521_v17 = vld [vmem:[#allocation2 + $0x60] sm:$0xff] }
 0x12a   : > { %v465_v20 = vpop.f32.mrf.mxu0 }
 0x12b   : > { %v543_v34 = vpack.c.bf16 %v465_v20, %v462_v18  ;;  %v524_v20 = vld [vmem:[#allocation2 + $0x78] sm:$0xff] }
 0x12c   : > { %v1142_v21 = vpop.f32.mrf.mxu0 }
 0x12e   : > { %v478_v22 = vpop.f32.mrf.mxu0 }
 0x130   : > { %v1143_v23 = vpop.f32.mrf.mxu0 }
 0x131   : > { %v546_v31 = vpack.c.bf16 %v1143_v23, %v1142_v21  ;;  %v522_v23 = vld [vmem:[#allocation2 + $0x68] sm:$0xff] }
 0x132   : > { %v481_v24 = vpop.f32.mrf.mxu0 }
 0x133   : > { %v545_v32 = vpack.c.bf16 %v481_v24, %v478_v22 }
 0x134   : > { %v1146_v25 = vpop.f32.mrf.mxu0 }
 0x136   : > { %v494_v26 = vpop.f32.mrf.mxu0 }
 0x138   : > { %v1147_v27 = vpop.f32.mrf.mxu0 }
 0x139   : > { %v548_v28 = vpack.c.bf16 %v1147_v27, %v1146_v25 }
 0x13a   : > { %v497_v29 = vpop.f32.mrf.mxu0 }
 0x13b   : > { %v547_v30 = vpack.c.bf16 %v497_v29, %v494_v26  ;;  %1148 = vmatprep.subr.bf16.mxu0 %v548_v28  ;;  %1180 = vmatprep.subr.bf16.mxu1 %v548_v28 }
 0x13c   : > { %1149 = vmatpush3.bf16.msra.mxu0 %v548_v28  ;;  %1188 = vmatpush3.bf16.msra.mxu1 %v548_v28 }
 0x13d   : > { %1150 = vmatprep.subr.bf16.mxu0 %v547_v30  ;;  %1181 = vmatprep.subr.bf16.mxu1 %v547_v30 }
 0x140   : > { %1151 = vmatpush3.bf16.msra.mxu0 %v547_v30  ;;  %1189 = vmatpush3.bf16.msra.mxu1 %v547_v30 }
 0x141   : > { %1152 = vmatprep.subr.bf16.mxu0 %v546_v31  ;;  %1182 = vmatprep.subr.bf16.mxu1 %v546_v31 }
 0x144   : > { %1153 = vmatpush3.bf16.msra.mxu0 %v546_v31  ;;  %1190 = vmatpush3.bf16.msra.mxu1 %v546_v31 }
 0x145   : > { %1154 = vmatprep.subr.bf16.mxu0 %v545_v32  ;;  %1183 = vmatprep.subr.bf16.mxu1 %v545_v32 }
 0x148   : > { %1155 = vmatpush3.bf16.msra.mxu0 %v545_v32  ;;  %1191 = vmatpush3.bf16.msra.mxu1 %v545_v32 }
 0x149   : > { %1156 = vmatprep.subr.bf16.mxu0 %v544_v33  ;;  %1184 = vmatprep.subr.bf16.mxu1 %v544_v33 }
 0x14c   : > { %1157 = vmatpush3.bf16.msra.mxu0 %v544_v33  ;;  %1192 = vmatpush3.bf16.msra.mxu1 %v544_v33 }
 0x14d   : > { %1158 = vmatprep.subr.bf16.mxu0 %v543_v34  ;;  %1185 = vmatprep.subr.bf16.mxu1 %v543_v34 }
 0x150   : > { %1159 = vmatpush3.bf16.msra.mxu0 %v543_v34  ;;  %1193 = vmatpush3.bf16.msra.mxu1 %v543_v34 }
 0x151   : > { %1160 = vmatprep.subr.bf16.mxu0 %v542_v35  ;;  %1186 = vmatprep.subr.bf16.mxu1 %v542_v35 }
 0x154   : > { %1161 = vmatpush3.bf16.msra.mxu0 %v542_v35  ;;  %1194 = vmatpush3.bf16.msra.mxu1 %v542_v35 }
 0x155   : > { %1162 = vmatprep.subr.bf16.mxu0 %v541_v36  ;;  %1187 = vmatprep.subr.bf16.mxu1 %v541_v36 }
 0x158   : > { %1163 = vmatpush3.bf16.msra.mxu0 %v541_v36  ;;  %1195 = vmatpush3.bf16.msra.mxu1 %v541_v36 }
 0x15b   : > { %1169 = vmatmul.mubr.bf16.vlgmr.msra.gmra.mxu1 %v1298_v37  ;;  %1165 = vmatmul.mubr.bf16.vlgmr.msra.gmra.mxu0 %v1302_v38 }
 0x15c   : > { %1172 = vmatprep.mubr.bf16.mxu1 %v1299_v39 }
 0x163   : > { %1173 = vmatmul.mubr.bf16.gmra.mxu1 %v1300_v40 }
 0x164   : > { %1176 = vmatprep.mubr.bf16.mxu1 %v1303_v41 }
 0x16b   : > { %1177 = vmatmul.mubr.bf16.gmra.mxu1 %v1304_v42 }
 0x21b   : > { %v1170_v45 = vpop.f32.mrf.mxu1  ;;  %v1166_v47 = vpop.f32.mrf.mxu0 }
 0x21c   : > { %v700_v49 = vadd.f32 %v1170_v45, %v515_v43  ;;  %v696_v50 = vadd.f32 %v1166_v47, %v511_v44 }
 0x21d   : > { %v647_v51 = vpop.f32.mrf.mxu1  ;;  %v631_v53 = vpop.f32.mrf.mxu0 }
 0x21e   : > { %716 = vst.msk [vmem:[#allocation2 + $0x30] sm:$0xff] %vm387_vm1, %v700_v49  ;;  %v698_v55 = vadd.f32 %v647_v51, %v513_v46  ;;  %712 = vst.msk [vmem:[#allocation2 + $0x10] sm:$0xff] %vm387_vm1, %v696_v50  ;;  %v694_v56 = vadd.f32 %v631_v53, %v509_v48 }
 0x21f   : > { %v1171_v57 = vpop.f32.mrf.mxu1  ;;  %v1167_v59 = vpop.f32.mrf.mxu0 }
 0x220   : > { %714 = vst.msk [vmem:[#allocation2 + $0x20] sm:$0xff] %vm387_vm1, %v698_v55  ;;  %v701_v61 = vadd.f32 %v1171_v57, %v516_v52  ;;  %710 = vst.msk [vmem:[#allocation2] sm:$0xff] %vm387_vm1, %v694_v56  ;;  %v697_v62 = vadd.f32 %v1167_v59, %v512_v54 }
 0x221   : > { %v650_v63 = vpop.f32.mrf.mxu1  ;;  %v634_v1 = vpop.f32.mrf.mxu0 }
 0x222   : > { %717 = vst.msk [vmem:[#allocation2 + $0x38] sm:$0xff] %vm387_vm1, %v701_v61  ;;  %v699_v2 = vadd.f32 %v650_v63, %v514_v58  ;;  %713 = vst.msk [vmem:[#allocation2 + $0x18] sm:$0xff] %vm387_vm1, %v697_v62  ;;  %v695_v3 = vadd.f32 %v634_v1, %v510_v60 }
 0x223   : > { %v1174_v4 = vpop.f32.mrf.mxu1 }
 0x224   : > { %715 = vst.msk [vmem:[#allocation2 + $0x28] sm:$0xff] %vm387_vm1, %v699_v2  ;;  %v704_v6 = vadd.f32 %v1174_v4, %v519_v0  ;;  %711 = vst.msk [vmem:[#allocation2 + $0x8] sm:$0xff] %vm387_vm1, %v695_v3 }
 0x225   : > { %v663_v7 = vpop.f32.mrf.mxu1 }
 0x226   : > { %720 = vst.msk [vmem:[#allocation2 + $0x50] sm:$0xff] %vm387_vm1, %v704_v6  ;;  %v702_v9 = vadd.f32 %v663_v7, %v517_v5 }
 0x227   : > { %v1175_v10 = vpop.f32.mrf.mxu1 }
 0x228   : > { %718 = vst.msk [vmem:[#allocation2 + $0x40] sm:$0xff] %vm387_vm1, %v702_v9  ;;  %v705_v12 = vadd.f32 %v1175_v10, %v520_v8 }
 0x229   : > { %v666_v13 = vpop.f32.mrf.mxu1 }
 0x22a   : > { %721 = vst.msk [vmem:[#allocation2 + $0x58] sm:$0xff] %vm387_vm1, %v705_v12  ;;  %v703_v15 = vadd.f32 %v666_v13, %v518_v11 }
 0x22b   : > { %v1178_v16 = vpop.f32.mrf.mxu1 }
 0x22c   : > { %719 = vst.msk [vmem:[#allocation2 + $0x48] sm:$0xff] %vm387_vm1, %v703_v15  ;;  %v708_v18 = vadd.f32 %v1178_v16, %v523_v14 }
 0x22d   : > { %v679_v19 = vpop.f32.mrf.mxu1 }
 0x22e   : > { %724 = vst.msk [vmem:[#allocation2 + $0x70] sm:$0xff] %vm387_vm1, %v708_v18  ;;  %v706_v21 = vadd.f32 %v679_v19, %v521_v17 }
 0x22f   : > { %v1179_v22 = vpop.f32.mrf.mxu1 }
 0x230   : > { %722 = vst.msk [vmem:[#allocation2 + $0x60] sm:$0xff] %vm387_vm1, %v706_v21  ;;  %v709_v24 = vadd.f32 %v1179_v22, %v524_v20  ;;  %729 = sbr.rel (%p1065_p13) target bundleno = 591 (0x24f), region = 48 }
 0x231   : > { %v682_v25 = vpop.f32.mrf.mxu1 }
 0x232   : > { %725 = vst.msk [vmem:[#allocation2 + $0x78] sm:$0xff] %vm387_vm1, %v709_v24  ;;  %v707_v26 = vadd.f32 %v682_v25, %v522_v23 }
 0x234   : > { %723 = vst.msk [vmem:[#allocation2 + $0x68] sm:$0xff] %vm387_vm1, %v707_v26 }
 0x235   : > { %v730_v27 = vld [vmem:[#allocation2] sm:$0xff]  ;;  %v731_v29 = vld [vmem:[#allocation2 + $0x8] sm:$0xff]  ;;  %v732_v32 = vld [vmem:[#allocation2 + $0x10] sm:$0xff]  ;;  %vm881_vm2 = vcmask 257024  }
 0x236   : > { %v1641_v28 = vld [vmem:[%s1742_s4] ss:$0 sm:$0xff]  ;;  %v733_v33 = vld [vmem:[#allocation2 + $0x18] sm:$0xff]  ;;  %v735_v38 = vld [vmem:[#allocation2 + $0x28] sm:$0xff] }
 0x237   : > { %v753_v30 = vadd.f32 %v1641_v28, %v730_v27  ;;  %v754_v31 = vadd.f32 %v1641_v28, %v731_v29  ;;  %v734_v34 = vld [vmem:[#allocation2 + $0x20] sm:$0xff]  ;;  %v755_v35 = vadd.f32 %v1641_v28, %v732_v32  ;;  %v756_v36 = vadd.f32 %v1641_v28, %v733_v33  ;;  %v736_v46 = vld [vmem:[#allocation2 + $0x30] sm:$0xff]  ;;  %v737_v47 = vld [vmem:[#allocation2 + $0x38] sm:$0xff] }
 0x238   : > { %v757_v37 = vadd.f32 %v1641_v28, %v734_v34  ;;  %v738_v48 = vld [vmem:[#allocation2 + $0x40] sm:$0xff]  ;;  %v739_v53 = vld [vmem:[#allocation2 + $0x48] sm:$0xff]  ;;  %v740_v54 = vld [vmem:[#allocation2 + $0x50] sm:$0xff]  ;;  %v758_v58 = vadd.f32 %v1641_v28, %v735_v38  ;;  %v759_v60 = vadd.f32 %v1641_v28, %v736_v46  ;;  %v760_v61 = vadd.f32 %v1641_v28, %v737_v47 }
 0x239   : > { %vm769_vm3 = vcmp.ge.f32.partialorder %v753_v30, 0.0  ;;  %v785_v39 = vmul.f32 0.01, %v753_v30  ;;  %vm770_vm4 = vcmp.ge.f32.partialorder %v754_v31, 0.0  ;;  %v786_v40 = vmul.f32 0.01, %v754_v31 }
 0x23a   : > { %vm771_vm5 = vcmp.ge.f32.partialorder %v755_v35, 0.0  ;;  %v787_v41 = vmul.f32 0.01, %v755_v35  ;;  %vm772_vm6 = vcmp.ge.f32.partialorder %v756_v36, 0.0  ;;  %v788_v42 = vmul.f32 0.01, %v756_v36 }
 0x23b   : > { %v801_v43 = vsel %vm769_vm3, %v753_v30, %v785_v39  ;;  %v802_v44 = vsel %vm770_vm4, %v754_v31, %v786_v40  ;;  %vm773_vm7 = vcmp.ge.f32.partialorder %v757_v37, 0.0  ;;  %v789_v45 = vmul.f32 0.01, %v757_v37  ;;  %v741_v6 = vld [vmem:[#allocation2 + $0x58] sm:$0xff]  ;;  %v742_v11 = vld [vmem:[#allocation2 + $0x60] sm:$0xff]  ;;  %v743_v12 = vld [vmem:[#allocation2 + $0x68] sm:$0xff] }
 0x23c   : > { %v1086_v49 = vpack.c.bf16 %v801_v43, %v801_v43  ;;  %v1087_v50 = vpack.c.bf16 %v802_v44, %v802_v44  ;;  %v803_v51 = vsel %vm771_vm5, %v755_v35, %v787_v41  ;;  %v804_v52 = vsel %vm772_vm6, %v756_v36, %v788_v42  ;;  %v744_v13 = vld [vmem:[#allocation2 + $0x70] sm:$0xff]  ;;  %v745_v17 = vld [vmem:[#allocation2 + $0x78] sm:$0xff] }
 0x23d   : > { %v1088_v55 = vpack.c.bf16 %v803_v51, %v803_v51  ;;  %v1089_v56 = vpack.c.bf16 %v804_v52, %v804_v52  ;;  %v805_v57 = vsel %vm773_vm7, %v757_v37, %v789_v45  ;;  %v761_v62 = vadd.f32 %v1641_v28, %v738_v48 }
 0x23e   : > { %882 = vst.msk [vmem:[%s1572_s2] sm:$0xf] %vm881_vm2, %v1086_v49  ;;  %883 = vst.msk [vmem:[%s1572_s2 + $0x4] sm:$0xf] %vm881_vm2, %v1087_v50  ;;  %v1090_v59 = vpack.c.bf16 %v805_v57, %v805_v57  ;;  %vm774_vm8 = vcmp.ge.f32.partialorder %v758_v58, 0.0  ;;  %v762_v0 = vadd.f32 %v1641_v28, %v739_v53  ;;  %v763_v1 = vadd.f32 %v1641_v28, %v740_v54 }
 0x23f   : > { %884 = vst.msk [vmem:[%s1572_s2 + $0x8] sm:$0xf] %vm881_vm2, %v1088_v55  ;;  %885 = vst.msk [vmem:[%s1572_s2 + $0xc] sm:$0xf] %vm881_vm2, %v1089_v56  ;;  %v790_v63 = vmul.f32 0.01, %v758_v58  ;;  %v764_v21 = vadd.f32 %v1641_v28, %v741_v6  ;;  %v765_v23 = vadd.f32 %v1641_v28, %v742_v11  ;;  %v766_v24 = vadd.f32 %v1641_v28, %v743_v12 }
 0x240   : > { %886 = vst.msk [vmem:[%s1572_s2 + $0x10] sm:$0xf] %vm881_vm2, %v1090_v59  ;;  %vm775_vm9 = vcmp.ge.f32.partialorder %v759_v60, 0.0  ;;  %v791_v2 = vmul.f32 0.01, %v759_v60  ;;  %vm776_vm10 = vcmp.ge.f32.partialorder %v760_v61, 0.0  ;;  %v767_v25 = vadd.f32 %v1641_v28, %v744_v13 }
 0x241   : > { %v792_v3 = vmul.f32 0.01, %v760_v61  ;;  %v806_v4 = vsel %vm774_vm8, %v758_v58, %v790_v63  ;;  %vm777_vm11 = vcmp.ge.f32.partialorder %v761_v62, 0.0  ;;  %v793_v5 = vmul.f32 0.01, %v761_v62 }
 0x242   : > { %vm778_vm12 = vcmp.ge.f32.partialorder %v762_v0, 0.0  ;;  %v1091_v7 = vpack.c.bf16 %v806_v4, %v806_v4  ;;  %v807_v8 = vsel %vm775_vm9, %v759_v60, %v791_v2  ;;  %v794_v10 = vmul.f32 0.01, %v762_v0 }
 0x243   : > { %v808_v9 = vsel %vm776_vm10, %v760_v61, %v792_v3  ;;  %v1092_v14 = vpack.c.bf16 %v807_v8, %v807_v8  ;;  %v809_v16 = vsel %vm777_vm11, %v761_v62, %v793_v5  ;;  %vm779_vm13 = vcmp.ge.f32.partialorder %v763_v1, 0.0 }
 0x244   : > { %v1093_v15 = vpack.c.bf16 %v808_v9, %v808_v9  ;;  %887 = vst.msk [vmem:[%s1572_s2 + $0x14] sm:$0xf] %vm881_vm2, %v1091_v7  ;;  %v1094_v18 = vpack.c.bf16 %v809_v16, %v809_v16  ;;  %v810_v19 = vsel %vm778_vm12, %v762_v0, %v794_v10  ;;  %v795_v20 = vmul.f32 0.01, %v763_v1 }
 0x245   : > { %888 = vst.msk [vmem:[%s1572_s2 + $0x18] sm:$0xf] %vm881_vm2, %v1092_v14  ;;  %v1095_v22 = vpack.c.bf16 %v810_v19, %v810_v19  ;;  %vm780_vm14 = vcmp.ge.f32.partialorder %v764_v21, 0.0  ;;  %v796_v27 = vmul.f32 0.01, %v764_v21  ;;  %v768_v29 = vadd.f32 %v1641_v28, %v745_v17 }
 0x246   : > { %889 = vst.msk [vmem:[%s1572_s2 + $0x1c] sm:$0xf] %vm881_vm2, %v1093_v15  ;;  %890 = vst.msk [vmem:[%s1572_s2 + $0x20] sm:$0xf] %vm881_vm2, %v1094_v18  ;;  %v811_v26 = vsel %vm779_vm13, %v763_v1, %v795_v20  ;;  %vm781_vm15 = vcmp.ge.f32.partialorder %v765_v23, 0.0  ;;  %vm782_vm0 = vcmp.ge.f32.partialorder %v766_v24, 0.0 }
 0x247   : > { %891 = vst.msk [vmem:[%s1572_s2 + $0x24] sm:$0xf] %vm881_vm2, %v1095_v22  ;;  %v1096_v30 = vpack.c.bf16 %v811_v26, %v811_v26  ;;  %v797_v31 = vmul.f32 0.01, %v765_v23  ;;  %v812_v32 = vsel %vm780_vm14, %v764_v21, %v796_v27  ;;  %v798_v33 = vmul.f32 0.01, %v766_v24 }
 0x248   : > { %vm783_vm1 = vcmp.ge.f32.partialorder %v767_v25, 0.0  ;;  %v799_v34 = vmul.f32 0.01, %v767_v25  ;;  %v1097_v35 = vpack.c.bf16 %v812_v32, %v812_v32  ;;  %vm784_vm3 = vcmp.ge.f32.partialorder %v768_v29, 0.0 }
 0x249   : > { %892 = vst.msk [vmem:[%s1572_s2 + $0x28] sm:$0xf] %vm881_vm2, %v1096_v30  ;;  %v813_v36 = vsel %vm781_vm15, %v765_v23, %v797_v31  ;;  %v800_v28 = vmul.f32 0.01, %v768_v29  ;;  %v814_v38 = vsel %vm782_vm0, %v766_v24, %v798_v33 }
 0x24a   : > { %v1098_v37 = vpack.c.bf16 %v813_v36, %v813_v36  ;;  %v815_v39 = vsel %vm783_vm1, %v767_v25, %v799_v34  ;;  %893 = vst.msk [vmem:[%s1572_s2 + $0x2c] sm:$0xf] %vm881_vm2, %v1097_v35  ;;  %v1099_v40 = vpack.c.bf16 %v814_v38, %v814_v38 }
 0x24b   : > { %v1100_v41 = vpack.c.bf16 %v815_v39, %v815_v39  ;;  %v816_v42 = vsel %vm784_vm3, %v768_v29, %v800_v28 }
 0x24c   : > { %894 = vst.msk [vmem:[%s1572_s2 + $0x30] sm:$0xf] %vm881_vm2, %v1098_v37  ;;  %v1101_v43 = vpack.c.bf16 %v816_v42, %v816_v42  ;;  %895 = vst.msk [vmem:[%s1572_s2 + $0x34] sm:$0xf] %vm881_vm2, %v1099_v40 }
 0x24d   : > { %896 = vst.msk [vmem:[%s1572_s2 + $0x38] sm:$0xf] %vm881_vm2, %v1100_v41 }
 0x24e   : > { %897 = vst.msk [vmem:[%s1572_s2 + $0x3c] sm:$0xf] %vm881_vm2, %v1101_v43 }
 0x24f PF: > { %s17_s24 = sadd.s32 1, %s1415_s24   ;;  %s1743_s27 = sld [smem:[#allocation6_spill]] }
 0x250   : > { %p14_p0 = scmp.ge.s32.totalorder %s17_s24, 10   ;;  %s1744_s25 = sld [smem:[#allocation7_spill]] }
 0x251   : > { %s1745_s5 = sld [smem:[#allocation8_spill]]  ;;  %s1746_s15 = smov %s1383_s16 }
 0x252   : > { %s1747_s16 = smov %s1387_s17  ;;  %s1748_s17 = smov %s1532_s26 }
 0x253   : > { %s1749_s18 = smov %s1403_s21  ;;  %s1750_s19 = smov %s1407_s22 }
 0x254   : > { %s1751_s20 = smov %s1411_s23  ;;  %16 = sbr.rel (!%p14_p0) target bundleno = 10 (0xa), region = 87 }
 0x255   : > { %s1752_s21 = smov %s1743_s27 }
 0x256   : > { %s1753_s22 = smov %s1744_s25 }
 0x257   : > { %s1754_s23 = smov %s1745_s5 }
 0x259   :  { %928 = vsyncpa [#allocation4], 1 }
 0x25a   :  { %930 = vsyncpa [#allocation4 + $0x1], 1 }

</bundles_post_ra>
